<compile_context>
chip_gen: v5e
topology: v5e:2x2
jax: 0.10.0
libtpu: 0.0.40
codegen_flags: <defaults>
</compile_context>

<pallas_src>
import functools

import jax
import jax.numpy as jnp
import numpy as np
from jax.experimental import pallas as pl
from jax.experimental.pallas import tpu as pltpu

KSS = (8, 5, 3)
BN_EPS = 1e-5
HALO = 8          # zero halo columns on each side of the interior (>= max pad of 4)


def _resblock_kernel(x_ref, w1_ref, b1_ref, w2_ref, b2_ref, w3_ref, b3_ref,
                     wsc_ref, bsc_ref, out_ref, pad_ref, *, nb, bn_shortcut):
    L = x_ref.shape[-1]
    cmax = pad_ref.shape[0]
    off = HALO

    # Zero only the halo strips.  The interior writes below never touch them, so this
    # replaces the previous three full (L+ks-1, C) zero-fills per grid step with two
    # tiny (C, HALO) stores.
    pad_ref[:, 0:off] = jnp.zeros((cmax, off), pad_ref.dtype)
    pad_ref[:, off + L:off + L + HALO] = jnp.zeros((cmax, HALO), pad_ref.dtype)

    def conv_same(h, w_ref, b_ref):
        ks, cout, cin = w_ref.shape
        left = (ks - 1) // 2                      # PyTorch padding='same'
        # Interior write in bf16 (MXU operand dtype); halos stay zero.
        pad_ref[0:cin, off:off + L] = h.astype(pad_ref.dtype)
        acc = jnp.zeros((cout, L), jnp.float32)
        for k in range(ks):                       # tap-wise (cout,cin)x(cin,L) MXU matmuls
            s = off - left + k                    # static lane offset, always in-bounds
            acc = acc + jnp.dot(w_ref[k], pad_ref[0:cin, s:s + L],
                                preferred_element_type=jnp.float32)
        return acc + b_ref[...]                   # folded-BN bias (cout, 1), f32

    for b in range(nb):                           # static unroll over the batch block
        x = x_ref[b]                              # (Cin, L)
        h = jnp.maximum(conv_same(x, w1_ref, b1_ref), 0.0)   # ConvBlock(ni, nf, 8) + ReLU
        h = jnp.maximum(conv_same(h, w2_ref, b2_ref), 0.0)   # ConvBlock(nf, nf, 5) + ReLU
        h = conv_same(h, w3_ref, b3_ref)                     # ConvBlock(nf, nf, 3), act=None
        if bn_shortcut:
            # BatchNorm1d shortcut: per-channel scale+bias on the VPU (no matmul).
            sc = x.astype(jnp.float32) * wsc_ref[...] + bsc_ref[...]
        else:
            # ConvBlock(ni, nf, 1) shortcut: single (Cout, Cin) x (Cin, L) matmul.
            sc = jnp.dot(wsc_ref[0], x.astype(jnp.bfloat16),
                         preferred_element_type=jnp.float32) + bsc_ref[...]
        out_ref[b] = jnp.maximum(h + sc, 0.0).astype(out_ref.dtype)


def _pick_nb(n):
    # Amortize the ~0.35us per-grid-step overhead, but keep >= 2 parallel grid blocks
    # so both TensorCores (megacore / v7x) have work.
    for nb in (8, 4, 2):
        if n % nb == 0 and n // nb >= 2:
            return nb
    return 1


def resblock_forward(x_ncl, params):
    N, Cin, L = x_ncl.shape
    Cf = params["w1"].shape[1]
    bn_shortcut = bool(params["bn_shortcut"])
    NB = _pick_nb(N)
    Cmax = max(Cin, Cf)

    kernel = functools.partial(_resblock_kernel, nb=NB, bn_shortcut=bn_shortcut)

    w_args = (params["w1"], params["b1"], params["w2"], params["b2"],
              params["w3"], params["b3"], params["wsc"], params["bsc"])

    in_specs = [pl.BlockSpec((NB, Cin, L), lambda n: (n, 0, 0))]
    for a in w_args:
        in_specs.append(pl.BlockSpec(a.shape, lambda n, nd=a.ndim: (0,) * nd))

    # Explicit VMEM budget: double-buffered x/out blocks + weights + shared pad scratch
    # + a few live f32 (Cf, L) intermediates, with headroom.  Capped well under v7x's
    # 64 MiB physical VMEM.
    est = (2 * NB * (Cin + Cf) * L * x_ncl.dtype.itemsize
           + sum(int(np.prod(a.shape)) * a.dtype.itemsize for a in w_args)
           + Cmax * (L + 2 * HALO) * 2
           + 6 * Cf * L * 4)
    vmem_limit = int(min(48 * 2**20, max(4 * 2**20, 4 * est)))

    out = pl.pallas_call(
        kernel,
        out_shape=jax.ShapeDtypeStruct((N, Cf, L), x_ncl.dtype),
        grid=(N // NB,),
        in_specs=in_specs,
        out_specs=pl.BlockSpec((NB, Cf, L), lambda n: (n, 0, 0)),
        scratch_shapes=[
            # single shared halo-padded activation buffer, reused by all three convs
            pltpu.VMEM((Cmax, L + 2 * HALO), jnp.bfloat16),
        ],
        compiler_params=pltpu.CompilerParams(
            dimension_semantics=("parallel",),
            vmem_limit_bytes=vmem_limit),
    )(x_ncl, *w_args)
    return out


def init_params(key, ni, nf, kss=KSS):
    keys = iter(jax.random.split(key, 32))

    def conv_bn(cin, cout, ks):
        # PyTorch Conv1d weight (cout, cin, ks) stored as (ks, cout, cin): each tap is a
        # (cout, cin) x (cin, L) matmul in the NCL kernel layout.  Weights in bf16
        # (MXU operands), folded-BN bias kept in f32.
        w = 0.1 * jax.random.normal(next(keys), (ks, cout, cin), jnp.float32)
        gamma = jax.random.uniform(next(keys), (cout,), jnp.float32, 0.5, 1.5)
        beta = 0.1 * jax.random.normal(next(keys), (cout,), jnp.float32)
        mean = 0.1 * jax.random.normal(next(keys), (cout,), jnp.float32)
        var = jax.random.uniform(next(keys), (cout,), jnp.float32, 0.5, 1.5)
        scale = gamma / jnp.sqrt(var + BN_EPS)
        w_folded = (w * scale[None, :, None]).astype(jnp.bfloat16)
        b_folded = (beta - mean * scale)[:, None]                  # (cout, 1) f32
        return w_folded, b_folded

    p = {}
    p["w1"], p["b1"] = conv_bn(ni, nf, kss[0])
    p["w2"], p["b2"] = conv_bn(nf, nf, kss[1])
    p["w3"], p["b3"] = conv_bn(nf, nf, kss[2])
    p["bn_shortcut"] = (ni == nf)
    if ni == nf:
        # shortcut = BatchNorm1d(ni): per-channel affine (VPU path, no CxC matmul)
        gamma = jax.random.uniform(next(keys), (ni,), jnp.float32, 0.5, 1.5)
        beta = 0.1 * jax.random.normal(next(keys), (ni,), jnp.float32)
        mean = 0.1 * jax.random.normal(next(keys), (ni,), jnp.float32)
        var = jax.random.uniform(next(keys), (ni,), jnp.float32, 0.5, 1.5)
        scale = gamma / jnp.sqrt(var + BN_EPS)
        p["wsc"] = scale[:, None]                                  # (ni, 1) f32
        p["bsc"] = (beta - mean * scale)[:, None]                  # (ni, 1) f32
    else:
        # shortcut = ConvBlock(ni, nf, 1, act=None)
        p["wsc"], p["bsc"] = conv_bn(ni, nf, 1)                    # (1, nf, ni) bf16
    return p


def resblock_reference(x_ncl, params):
    def conv(h, w_kco_ci, b):
        w = jnp.transpose(w_kco_ci.astype(jnp.float32), (1, 2, 0))  # (ks,co,ci)->(co,ci,ks)
        ks = w.shape[-1]
        left = (ks - 1) // 2
        right = ks - 1 - left
        y = jax.lax.conv_general_dilated(
            h, w, window_strides=(1,), padding=[(left, right)],
            dimension_numbers=("NCW", "OIW", "NCW"))
        return y + b[None]

    h = jax.nn.relu(conv(x_ncl, params["w1"], params["b1"]))
    h = jax.nn.relu(conv(h, params["w2"], params["b2"]))
    h = conv(h, params["w3"], params["b3"])
    if params["bn_shortcut"]:
        sc = x_ncl * params["wsc"][None] + params["bsc"][None]
    else:
        sc = conv(x_ncl, params["wsc"], params["bsc"])
    return jax.nn.relu(h + sc)


if __name__ == "__main__":
    key = jax.random.PRNGKey(0)
    k_x1, k_x2, k_p1, k_p2 = jax.random.split(key, 4)

    N, L = 2, 16
    # case 1: ni != nf -> 1x1-conv shortcut; case 2: ni == nf -> BatchNorm shortcut
    for ni, nf, kx, kp in [(4, 8, k_x1, k_p1), (8, 8, k_x2, k_p2)]:
        x = jax.random.normal(kx, (N, ni, L), jnp.float32)         # PyTorch NCL input
        params = init_params(kp, ni, nf)
        out = jax.block_until_ready(resblock_forward(x, params))
        ref = resblock_reference(x, params)
        assert out.shape == (N, nf, L)
        # bf16 MXU operands (f32 accumulation) -> slightly looser tolerance than pure f32
        np.testing.assert_allclose(np.asarray(out), np.asarray(ref), rtol=2e-2, atol=2e-2)
    print("KERNEL_OK")
</pallas_src>

<mosaic_0001>
module attributes {stable_mosaic.version = 11 : i64} {
  func.func @_resblock_kernel(%arg0: i32, %arg1: memref<1x4x16xf32, #tpu.memory_space<vmem>>, %arg2: memref<8x8x4xbf16, #tpu.memory_space<vmem>>, %arg3: memref<8x1xf32, #tpu.memory_space<vmem>>, %arg4: memref<5x8x8xbf16, #tpu.memory_space<vmem>>, %arg5: memref<8x1xf32, #tpu.memory_space<vmem>>, %arg6: memref<3x8x8xbf16, #tpu.memory_space<vmem>>, %arg7: memref<8x1xf32, #tpu.memory_space<vmem>>, %arg8: memref<1x8x4xbf16, #tpu.memory_space<vmem>>, %arg9: memref<8x1xf32, #tpu.memory_space<vmem>>, %arg10: memref<1x8x16xf32, #tpu.memory_space<vmem>>, %arg11: memref<8x32xbf16, #tpu.memory_space<vmem>>) attributes {dimension_semantics = [#tpu.dimension_semantics<parallel>], iteration_bounds = array<i64: 2>, scalar_prefetch = 0 : i64, scratch_operands = 1 : i64, tpu.core_type = #tpu.core_type<tc>, window_params = [{transform_indices = @transform_0, window_bounds = array<i64: 1, 4, 16>}, {pipeline_mode = #tpu.pipeline_mode<synchronous>, transform_indices = @transform_1, window_bounds = array<i64: 8, 8, 4>}, {pipeline_mode = #tpu.pipeline_mode<synchronous>, transform_indices = @transform_2, window_bounds = array<i64: 8, 1>}, {pipeline_mode = #tpu.pipeline_mode<synchronous>, transform_indices = @transform_3, window_bounds = array<i64: 5, 8, 8>}, {pipeline_mode = #tpu.pipeline_mode<synchronous>, transform_indices = @transform_4, window_bounds = array<i64: 8, 1>}, {pipeline_mode = #tpu.pipeline_mode<synchronous>, transform_indices = @transform_5, window_bounds = array<i64: 3, 8, 8>}, {pipeline_mode = #tpu.pipeline_mode<synchronous>, transform_indices = @transform_6, window_bounds = array<i64: 8, 1>}, {pipeline_mode = #tpu.pipeline_mode<synchronous>, transform_indices = @transform_7, window_bounds = array<i64: 1, 8, 4>}, {pipeline_mode = #tpu.pipeline_mode<synchronous>, transform_indices = @transform_8, window_bounds = array<i64: 8, 1>}, {transform_indices = @transform_9, window_bounds = array<i64: 1, 8, 16>}]} {
    %cst = arith.constant 0.000000e+00 : bf16
    %0 = vector.broadcast %cst : bf16 to vector<8x8xbf16>
    %c0 = arith.constant 0 : index
    %c0_0 = arith.constant 0 : index
    %1 = vector.load %arg11[%c0, %c0_0] : memref<8x32xbf16, #tpu.memory_space<vmem>>, vector<8x8xbf16>
    tpu.vector_store %arg11[%c0, %c0_0], %0 {strides = array<i32>} : memref<8x32xbf16, #tpu.memory_space<vmem>>, vector<8x8xbf16>,
    %cst_1 = arith.constant 0.000000e+00 : bf16
    %2 = vector.broadcast %cst_1 : bf16 to vector<8x8xbf16>
    %c0_2 = arith.constant 0 : index
    %c24 = arith.constant 24 : index
    %3 = vector.load %arg11[%c0_2, %c24] : memref<8x32xbf16, #tpu.memory_space<vmem>>, vector<8x8xbf16>
    tpu.vector_store %arg11[%c0_2, %c24], %2 {strides = array<i32>} : memref<8x32xbf16, #tpu.memory_space<vmem>>, vector<8x8xbf16>,
    %c0_3 = arith.constant 0 : index
    %c0_4 = arith.constant 0 : index
    %c0_5 = arith.constant 0 : index
    %4 = vector.load %arg1[%c0_3, %c0_4, %c0_5] : memref<1x4x16xf32, #tpu.memory_space<vmem>>, vector<1x4x16xf32>
    %5 = vector.shape_cast %4 : vector<1x4x16xf32> to vector<4x16xf32>
    %6 = arith.truncf %5 : vector<4x16xf32> to vector<4x16xbf16>
    %c0_6 = arith.constant 0 : index
    %c8 = arith.constant 8 : index
    %7 = vector.load %arg11[%c0_6, %c8] : memref<8x32xbf16, #tpu.memory_space<vmem>>, vector<4x16xbf16>
    tpu.vector_store %arg11[%c0_6, %c8], %6 {strides = array<i32>} : memref<8x32xbf16, #tpu.memory_space<vmem>>, vector<4x16xbf16>,
    %cst_7 = arith.constant 0.000000e+00 : f32
    %8 = vector.broadcast %cst_7 : f32 to vector<8x16xf32>
    %c0_8 = arith.constant 0 : index
    %c0_9 = arith.constant 0 : index
    %c0_10 = arith.constant 0 : index
    %9 = vector.load %arg2[%c0_8, %c0_9, %c0_10] : memref<8x8x4xbf16, #tpu.memory_space<vmem>>, vector<1x8x4xbf16>
    %10 = vector.shape_cast %9 : vector<1x8x4xbf16> to vector<8x4xbf16>
    %c0_11 = arith.constant 0 : index
    %c5 = arith.constant 5 : index
    %11 = vector.load %arg11[%c0_11, %c5] : memref<8x32xbf16, #tpu.memory_space<vmem>>, vector<4x16xbf16>
    %cst_12 = arith.constant dense<0.000000e+00> : vector<8x16xf32>
    %12 = tpu.matmul %10, %11, %cst_12 {dimension_numbers = #tpu.dot_dimension_numbers<[1], [0], [0], [1], [0, 0, 1, 1], [], []>} : vector<8x4xbf16>, vector<4x16xbf16>, vector<8x16xf32> -> vector<8x16xf32>
    %13 = arith.addf %8, %12 : vector<8x16xf32>
    %c1 = arith.constant 1 : index
    %c0_13 = arith.constant 0 : index
    %c0_14 = arith.constant 0 : index
    %14 = vector.load %arg2[%c1, %c0_13, %c0_14] : memref<8x8x4xbf16, #tpu.memory_space<vmem>>, vector<1x8x4xbf16>
    %15 = vector.shape_cast %14 : vector<1x8x4xbf16> to vector<8x4xbf16>
    %c0_15 = arith.constant 0 : index
    %c6 = arith.constant 6 : index
    %16 = vector.load %arg11[%c0_15, %c6] : memref<8x32xbf16, #tpu.memory_space<vmem>>, vector<4x16xbf16>
    %cst_16 = arith.constant dense<0.000000e+00> : vector<8x16xf32>
    %17 = tpu.matmul %15, %16, %cst_16 {dimension_numbers = #tpu.dot_dimension_numbers<[1], [0], [0], [1], [0, 0, 1, 1], [], []>} : vector<8x4xbf16>, vector<4x16xbf16>, vector<8x16xf32> -> vector<8x16xf32>
    %18 = arith.addf %13, %17 : vector<8x16xf32>
    %c2 = arith.constant 2 : index
    %c0_17 = arith.constant 0 : index
    %c0_18 = arith.constant 0 : index
    %19 = vector.load %arg2[%c2, %c0_17, %c0_18] : memref<8x8x4xbf16, #tpu.memory_space<vmem>>, vector<1x8x4xbf16>
    %20 = vector.shape_cast %19 : vector<1x8x4xbf16> to vector<8x4xbf16>
    %c0_19 = arith.constant 0 : index
    %c7 = arith.constant 7 : index
    %21 = vector.load %arg11[%c0_19, %c7] : memref<8x32xbf16, #tpu.memory_space<vmem>>, vector<4x16xbf16>
    %cst_20 = arith.constant dense<0.000000e+00> : vector<8x16xf32>
    %22 = tpu.matmul %20, %21, %cst_20 {dimension_numbers = #tpu.dot_dimension_numbers<[1], [0], [0], [1], [0, 0, 1, 1], [], []>} : vector<8x4xbf16>, vector<4x16xbf16>, vector<8x16xf32> -> vector<8x16xf32>
    %23 = arith.addf %18, %22 : vector<8x16xf32>
    %c3 = arith.constant 3 : index
    %c0_21 = arith.constant 0 : index
    %c0_22 = arith.constant 0 : index
    %24 = vector.load %arg2[%c3, %c0_21, %c0_22] : memref<8x8x4xbf16, #tpu.memory_space<vmem>>, vector<1x8x4xbf16>
    %25 = vector.shape_cast %24 : vector<1x8x4xbf16> to vector<8x4xbf16>
    %c0_23 = arith.constant 0 : index
    %c8_24 = arith.constant 8 : index
    %26 = vector.load %arg11[%c0_23, %c8_24] : memref<8x32xbf16, #tpu.memory_space<vmem>>, vector<4x16xbf16>
    %cst_25 = arith.constant dense<0.000000e+00> : vector<8x16xf32>
    %27 = tpu.matmul %25, %26, %cst_25 {dimension_numbers = #tpu.dot_dimension_numbers<[1], [0], [0], [1], [0, 0, 1, 1], [], []>} : vector<8x4xbf16>, vector<4x16xbf16>, vector<8x16xf32> -> vector<8x16xf32>
    %28 = arith.addf %23, %27 : vector<8x16xf32>
    %c4 = arith.constant 4 : index
    %c0_26 = arith.constant 0 : index
    %c0_27 = arith.constant 0 : index
    %29 = vector.load %arg2[%c4, %c0_26, %c0_27] : memref<8x8x4xbf16, #tpu.memory_space<vmem>>, vector<1x8x4xbf16>
    %30 = vector.shape_cast %29 : vector<1x8x4xbf16> to vector<8x4xbf16>
    %c0_28 = arith.constant 0 : index
    %c9 = arith.constant 9 : index
    %31 = vector.load %arg11[%c0_28, %c9] : memref<8x32xbf16, #tpu.memory_space<vmem>>, vector<4x16xbf16>
    %cst_29 = arith.constant dense<0.000000e+00> : vector<8x16xf32>
    %32 = tpu.matmul %30, %31, %cst_29 {dimension_numbers = #tpu.dot_dimension_numbers<[1], [0], [0], [1], [0, 0, 1, 1], [], []>} : vector<8x4xbf16>, vector<4x16xbf16>, vector<8x16xf32> -> vector<8x16xf32>
    %33 = arith.addf %28, %32 : vector<8x16xf32>
    %c5_30 = arith.constant 5 : index
    %c0_31 = arith.constant 0 : index
    %c0_32 = arith.constant 0 : index
    %34 = vector.load %arg2[%c5_30, %c0_31, %c0_32] : memref<8x8x4xbf16, #tpu.memory_space<vmem>>, vector<1x8x4xbf16>
    %35 = vector.shape_cast %34 : vector<1x8x4xbf16> to vector<8x4xbf16>
    %c0_33 = arith.constant 0 : index
    %c10 = arith.constant 10 : index
    %36 = vector.load %arg11[%c0_33, %c10] : memref<8x32xbf16, #tpu.memory_space<vmem>>, vector<4x16xbf16>
    %cst_34 = arith.constant dense<0.000000e+00> : vector<8x16xf32>
    %37 = tpu.matmul %35, %36, %cst_34 {dimension_numbers = #tpu.dot_dimension_numbers<[1], [0], [0], [1], [0, 0, 1, 1], [], []>} : vector<8x4xbf16>, vector<4x16xbf16>, vector<8x16xf32> -> vector<8x16xf32>
    %38 = arith.addf %33, %37 : vector<8x16xf32>
    %c6_35 = arith.constant 6 : index
    %c0_36 = arith.constant 0 : index
    %c0_37 = arith.constant 0 : index
    %39 = vector.load %arg2[%c6_35, %c0_36, %c0_37] : memref<8x8x4xbf16, #tpu.memory_space<vmem>>, vector<1x8x4xbf16>
    %40 = vector.shape_cast %39 : vector<1x8x4xbf16> to vector<8x4xbf16>
    %c0_38 = arith.constant 0 : index
    %c11 = arith.constant 11 : index
    %41 = vector.load %arg11[%c0_38, %c11] : memref<8x32xbf16, #tpu.memory_space<vmem>>, vector<4x16xbf16>
    %cst_39 = arith.constant dense<0.000000e+00> : vector<8x16xf32>
    %42 = tpu.matmul %40, %41, %cst_39 {dimension_numbers = #tpu.dot_dimension_numbers<[1], [0], [0], [1], [0, 0, 1, 1], [], []>} : vector<8x4xbf16>, vector<4x16xbf16>, vector<8x16xf32> -> vector<8x16xf32>
    %43 = arith.addf %38, %42 : vector<8x16xf32>
    %c7_40 = arith.constant 7 : index
    %c0_41 = arith.constant 0 : index
    %c0_42 = arith.constant 0 : index
    %44 = vector.load %arg2[%c7_40, %c0_41, %c0_42] : memref<8x8x4xbf16, #tpu.memory_space<vmem>>, vector<1x8x4xbf16>
    %45 = vector.shape_cast %44 : vector<1x8x4xbf16> to vector<8x4xbf16>
    %c0_43 = arith.constant 0 : index
    %c12 = arith.constant 12 : index
    %46 = vector.load %arg11[%c0_43, %c12] : memref<8x32xbf16, #tpu.memory_space<vmem>>, vector<4x16xbf16>
    %cst_44 = arith.constant dense<0.000000e+00> : vector<8x16xf32>
    %47 = tpu.matmul %45, %46, %cst_44 {dimension_numbers = #tpu.dot_dimension_numbers<[1], [0], [0], [1], [0, 0, 1, 1], [], []>} : vector<8x4xbf16>, vector<4x16xbf16>, vector<8x16xf32> -> vector<8x16xf32>
    %48 = arith.addf %43, %47 : vector<8x16xf32>
    %c0_45 = arith.constant 0 : index
    %c0_46 = arith.constant 0 : index
    %49 = vector.load %arg3[%c0_45, %c0_46] : memref<8x1xf32, #tpu.memory_space<vmem>>, vector<8x1xf32>
    %50 = vector.broadcast %49 : vector<8x1xf32> to vector<8x16xf32>
    %51 = arith.addf %48, %50 : vector<8x16xf32>
    %cst_47 = arith.constant 0.000000e+00 : f32
    %52 = vector.broadcast %cst_47 : f32 to vector<8x16xf32>
    %53 = arith.maximumf %51, %52 : vector<8x16xf32>
    %54 = arith.truncf %53 : vector<8x16xf32> to vector<8x16xbf16>
    %c0_48 = arith.constant 0 : index
    %c8_49 = arith.constant 8 : index
    %55 = vector.load %arg11[%c0_48, %c8_49] : memref<8x32xbf16, #tpu.memory_space<vmem>>, vector<8x16xbf16>
    tpu.vector_store %arg11[%c0_48, %c8_49], %54 {strides = array<i32>} : memref<8x32xbf16, #tpu.memory_space<vmem>>, vector<8x16xbf16>,
    %cst_50 = arith.constant 0.000000e+00 : f32
    %56 = vector.broadcast %cst_50 : f32 to vector<8x16xf32>
    %c0_51 = arith.constant 0 : index
    %c0_52 = arith.constant 0 : index
    %c0_53 = arith.constant 0 : index
    %57 = vector.load %arg4[%c0_51, %c0_52, %c0_53] : memref<5x8x8xbf16, #tpu.memory_space<vmem>>, vector<1x8x8xbf16>
    %58 = vector.shape_cast %57 : vector<1x8x8xbf16> to vector<8x8xbf16>
    %c0_54 = arith.constant 0 : index
    %c6_55 = arith.constant 6 : index
    %59 = vector.load %arg11[%c0_54, %c6_55] : memref<8x32xbf16, #tpu.memory_space<vmem>>, vector<8x16xbf16>
    %cst_56 = arith.constant dense<0.000000e+00> : vector<8x16xf32>
    %60 = tpu.matmul %58, %59, %cst_56 {dimension_numbers = #tpu.dot_dimension_numbers<[1], [0], [0], [1], [0, 0, 1, 1], [], []>} : vector<8x8xbf16>, vector<8x16xbf16>, vector<8x16xf32> -> vector<8x16xf32>
    %61 = arith.addf %56, %60 : vector<8x16xf32>
    %c1_57 = arith.constant 1 : index
    %c0_58 = arith.constant 0 : index
    %c0_59 = arith.constant 0 : index
    %62 = vector.load %arg4[%c1_57, %c0_58, %c0_59] : memref<5x8x8xbf16, #tpu.memory_space<vmem>>, vector<1x8x8xbf16>
    %63 = vector.shape_cast %62 : vector<1x8x8xbf16> to vector<8x8xbf16>
    %c0_60 = arith.constant 0 : index
    %c7_61 = arith.constant 7 : index
    %64 = vector.load %arg11[%c0_60, %c7_61] : memref<8x32xbf16, #tpu.memory_space<vmem>>, vector<8x16xbf16>
    %cst_62 = arith.constant dense<0.000000e+00> : vector<8x16xf32>
    %65 = tpu.matmul %63, %64, %cst_62 {dimension_numbers = #tpu.dot_dimension_numbers<[1], [0], [0], [1], [0, 0, 1, 1], [], []>} : vector<8x8xbf16>, vector<8x16xbf16>, vector<8x16xf32> -> vector<8x16xf32>
    %66 = arith.addf %61, %65 : vector<8x16xf32>
    %c2_63 = arith.constant 2 : index
    %c0_64 = arith.constant 0 : index
    %c0_65 = arith.constant 0 : index
    %67 = vector.load %arg4[%c2_63, %c0_64, %c0_65] : memref<5x8x8xbf16, #tpu.memory_space<vmem>>, vector<1x8x8xbf16>
    %68 = vector.shape_cast %67 : vector<1x8x8xbf16> to vector<8x8xbf16>
    %c0_66 = arith.constant 0 : index
    %c8_67 = arith.constant 8 : index
    %69 = vector.load %arg11[%c0_66, %c8_67] : memref<8x32xbf16, #tpu.memory_space<vmem>>, vector<8x16xbf16>
    %cst_68 = arith.constant dense<0.000000e+00> : vector<8x16xf32>
    %70 = tpu.matmul %68, %69, %cst_68 {dimension_numbers = #tpu.dot_dimension_numbers<[1], [0], [0], [1], [0, 0, 1, 1], [], []>} : vector<8x8xbf16>, vector<8x16xbf16>, vector<8x16xf32> -> vector<8x16xf32>
    %71 = arith.addf %66, %70 : vector<8x16xf32>
    %c3_69 = arith.constant 3 : index
    %c0_70 = arith.constant 0 : index
    %c0_71 = arith.constant 0 : index
    %72 = vector.load %arg4[%c3_69, %c0_70, %c0_71] : memref<5x8x8xbf16, #tpu.memory_space<vmem>>, vector<1x8x8xbf16>
    %73 = vector.shape_cast %72 : vector<1x8x8xbf16> to vector<8x8xbf16>
    %c0_72 = arith.constant 0 : index
    %c9_73 = arith.constant 9 : index
    %74 = vector.load %arg11[%c0_72, %c9_73] : memref<8x32xbf16, #tpu.memory_space<vmem>>, vector<8x16xbf16>
    %cst_74 = arith.constant dense<0.000000e+00> : vector<8x16xf32>
    %75 = tpu.matmul %73, %74, %cst_74 {dimension_numbers = #tpu.dot_dimension_numbers<[1], [0], [0], [1], [0, 0, 1, 1], [], []>} : vector<8x8xbf16>, vector<8x16xbf16>, vector<8x16xf32> -> vector<8x16xf32>
    %76 = arith.addf %71, %75 : vector<8x16xf32>
    %c4_75 = arith.constant 4 : index
    %c0_76 = arith.constant 0 : index
    %c0_77 = arith.constant 0 : index
    %77 = vector.load %arg4[%c4_75, %c0_76, %c0_77] : memref<5x8x8xbf16, #tpu.memory_space<vmem>>, vector<1x8x8xbf16>
    %78 = vector.shape_cast %77 : vector<1x8x8xbf16> to vector<8x8xbf16>
    %c0_78 = arith.constant 0 : index
    %c10_79 = arith.constant 10 : index
    %79 = vector.load %arg11[%c0_78, %c10_79] : memref<8x32xbf16, #tpu.memory_space<vmem>>, vector<8x16xbf16>
    %cst_80 = arith.constant dense<0.000000e+00> : vector<8x16xf32>
    %80 = tpu.matmul %78, %79, %cst_80 {dimension_numbers = #tpu.dot_dimension_numbers<[1], [0], [0], [1], [0, 0, 1, 1], [], []>} : vector<8x8xbf16>, vector<8x16xbf16>, vector<8x16xf32> -> vector<8x16xf32>
    %81 = arith.addf %76, %80 : vector<8x16xf32>
    %c0_81 = arith.constant 0 : index
    %c0_82 = arith.constant 0 : index
    %82 = vector.load %arg5[%c0_81, %c0_82] : memref<8x1xf32, #tpu.memory_space<vmem>>, vector<8x1xf32>
    %83 = vector.broadcast %82 : vector<8x1xf32> to vector<8x16xf32>
    %84 = arith.addf %81, %83 : vector<8x16xf32>
    %cst_83 = arith.constant 0.000000e+00 : f32
    %85 = vector.broadcast %cst_83 : f32 to vector<8x16xf32>
    %86 = arith.maximumf %84, %85 : vector<8x16xf32>
    %87 = arith.truncf %86 : vector<8x16xf32> to vector<8x16xbf16>
    %c0_84 = arith.constant 0 : index
    %c8_85 = arith.constant 8 : index
    %88 = vector.load %arg11[%c0_84, %c8_85] : memref<8x32xbf16, #tpu.memory_space<vmem>>, vector<8x16xbf16>
    tpu.vector_store %arg11[%c0_84, %c8_85], %87 {strides = array<i32>} : memref<8x32xbf16, #tpu.memory_space<vmem>>, vector<8x16xbf16>,
    %cst_86 = arith.constant 0.000000e+00 : f32
    %89 = vector.broadcast %cst_86 : f32 to vector<8x16xf32>
    %c0_87 = arith.constant 0 : index
    %c0_88 = arith.constant 0 : index
    %c0_89 = arith.constant 0 : index
    %90 = vector.load %arg6[%c0_87, %c0_88, %c0_89] : memref<3x8x8xbf16, #tpu.memory_space<vmem>>, vector<1x8x8xbf16>
    %91 = vector.shape_cast %90 : vector<1x8x8xbf16> to vector<8x8xbf16>
    %c0_90 = arith.constant 0 : index
    %c7_91 = arith.constant 7 : index
    %92 = vector.load %arg11[%c0_90, %c7_91] : memref<8x32xbf16, #tpu.memory_space<vmem>>, vector<8x16xbf16>
    %cst_92 = arith.constant dense<0.000000e+00> : vector<8x16xf32>
    %93 = tpu.matmul %91, %92, %cst_92 {dimension_numbers = #tpu.dot_dimension_numbers<[1], [0], [0], [1], [0, 0, 1, 1], [], []>} : vector<8x8xbf16>, vector<8x16xbf16>, vector<8x16xf32> -> vector<8x16xf32>
    %94 = arith.addf %89, %93 : vector<8x16xf32>
    %c1_93 = arith.constant 1 : index
    %c0_94 = arith.constant 0 : index
    %c0_95 = arith.constant 0 : index
    %95 = vector.load %arg6[%c1_93, %c0_94, %c0_95] : memref<3x8x8xbf16, #tpu.memory_space<vmem>>, vector<1x8x8xbf16>
    %96 = vector.shape_cast %95 : vector<1x8x8xbf16> to vector<8x8xbf16>
    %c0_96 = arith.constant 0 : index
    %c8_97 = arith.constant 8 : index
    %97 = vector.load %arg11[%c0_96, %c8_97] : memref<8x32xbf16, #tpu.memory_space<vmem>>, vector<8x16xbf16>
    %cst_98 = arith.constant dense<0.000000e+00> : vector<8x16xf32>
    %98 = tpu.matmul %96, %97, %cst_98 {dimension_numbers = #tpu.dot_dimension_numbers<[1], [0], [0], [1], [0, 0, 1, 1], [], []>} : vector<8x8xbf16>, vector<8x16xbf16>, vector<8x16xf32> -> vector<8x16xf32>
    %99 = arith.addf %94, %98 : vector<8x16xf32>
    %c2_99 = arith.constant 2 : index
    %c0_100 = arith.constant 0 : index
    %c0_101 = arith.constant 0 : index
    %100 = vector.load %arg6[%c2_99, %c0_100, %c0_101] : memref<3x8x8xbf16, #tpu.memory_space<vmem>>, vector<1x8x8xbf16>
    %101 = vector.shape_cast %100 : vector<1x8x8xbf16> to vector<8x8xbf16>
    %c0_102 = arith.constant 0 : index
    %c9_103 = arith.constant 9 : index
    %102 = vector.load %arg11[%c0_102, %c9_103] : memref<8x32xbf16, #tpu.memory_space<vmem>>, vector<8x16xbf16>
    %cst_104 = arith.constant dense<0.000000e+00> : vector<8x16xf32>
    %103 = tpu.matmul %101, %102, %cst_104 {dimension_numbers = #tpu.dot_dimension_numbers<[1], [0], [0], [1], [0, 0, 1, 1], [], []>} : vector<8x8xbf16>, vector<8x16xbf16>, vector<8x16xf32> -> vector<8x16xf32>
    %104 = arith.addf %99, %103 : vector<8x16xf32>
    %c0_105 = arith.constant 0 : index
    %c0_106 = arith.constant 0 : index
    %105 = vector.load %arg7[%c0_105, %c0_106] : memref<8x1xf32, #tpu.memory_space<vmem>>, vector<8x1xf32>
    %106 = vector.broadcast %105 : vector<8x1xf32> to vector<8x16xf32>
    %107 = arith.addf %104, %106 : vector<8x16xf32>
    %c0_107 = arith.constant 0 : index
    %c0_108 = arith.constant 0 : index
    %c0_109 = arith.constant 0 : index
    %108 = vector.load %arg8[%c0_107, %c0_108, %c0_109] : memref<1x8x4xbf16, #tpu.memory_space<vmem>>, vector<1x8x4xbf16>
    %109 = vector.shape_cast %108 : vector<1x8x4xbf16> to vector<8x4xbf16>
    %110 = arith.truncf %5 : vector<4x16xf32> to vector<4x16xbf16>
    %cst_110 = arith.constant dense<0.000000e+00> : vector<8x16xf32>
    %111 = tpu.matmul %109, %110, %cst_110 {dimension_numbers = #tpu.dot_dimension_numbers<[1], [0], [0], [1], [0, 0, 1, 1], [], []>} : vector<8x4xbf16>, vector<4x16xbf16>, vector<8x16xf32> -> vector<8x16xf32>
    %c0_111 = arith.constant 0 : index
    %c0_112 = arith.constant 0 : index
    %112 = vector.load %arg9[%c0_111, %c0_112] : memref<8x1xf32, #tpu.memory_space<vmem>>, vector<8x1xf32>
    %113 = vector.broadcast %112 : vector<8x1xf32> to vector<8x16xf32>
    %114 = arith.addf %111, %113 : vector<8x16xf32>
    %115 = arith.addf %107, %114 : vector<8x16xf32>
    %cst_113 = arith.constant 0.000000e+00 : f32
    %116 = vector.broadcast %cst_113 : f32 to vector<8x16xf32>
    %117 = arith.maximumf %115, %116 : vector<8x16xf32>
    %c0_114 = arith.constant 0 : index
    %c0_115 = arith.constant 0 : index
    %c0_116 = arith.constant 0 : index
    %118 = vector.load %arg10[%c0_114, %c0_115, %c0_116] : memref<1x8x16xf32, #tpu.memory_space<vmem>>, vector<1x8x16xf32>
    %119 = vector.shape_cast %118 : vector<1x8x16xf32> to vector<8x16xf32>
    %120 = vector.shape_cast %117 : vector<8x16xf32> to vector<1x8x16xf32>
    tpu.vector_store %arg10[%c0_114, %c0_115, %c0_116], %120 {strides = array<i32>} : memref<1x8x16xf32, #tpu.memory_space<vmem>>, vector<1x8x16xf32>,
    return
  }
  func.func @transform_0(%arg0: i32) -> (i32, i32, i32) {
    %c0_i32 = arith.constant 0 : i32
    %c0_i32_0 = arith.constant 0 : i32
    %c0_i32_1 = arith.constant 0 : i32
    return %arg0, %c0_i32, %c0_i32_0 : i32, i32, i32
  }
  func.func @transform_1(%arg0: i32) -> (i32, i32, i32) {
    %c0_i32 = arith.constant 0 : i32
    %c0_i32_0 = arith.constant 0 : i32
    %c0_i32_1 = arith.constant 0 : i32
    %c0_i32_2 = arith.constant 0 : i32
    return %c0_i32, %c0_i32_0, %c0_i32_1 : i32, i32, i32
  }
  func.func @transform_2(%arg0: i32) -> (i32, i32) {
    %c0_i32 = arith.constant 0 : i32
    %c0_i32_0 = arith.constant 0 : i32
    %c0_i32_1 = arith.constant 0 : i32
    return %c0_i32, %c0_i32_0 : i32, i32
  }
  func.func @transform_3(%arg0: i32) -> (i32, i32, i32) {
    %c0_i32 = arith.constant 0 : i32
    %c0_i32_0 = arith.constant 0 : i32
    %c0_i32_1 = arith.constant 0 : i32
    %c0_i32_2 = arith.constant 0 : i32
    return %c0_i32, %c0_i32_0, %c0_i32_1 : i32, i32, i32
  }
  func.func @transform_4(%arg0: i32) -> (i32, i32) {
    %c0_i32 = arith.constant 0 : i32
    %c0_i32_0 = arith.constant 0 : i32
    %c0_i32_1 = arith.constant 0 : i32
    return %c0_i32, %c0_i32_0 : i32, i32
  }
  func.func @transform_5(%arg0: i32) -> (i32, i32, i32) {
    %c0_i32 = arith.constant 0 : i32
    %c0_i32_0 = arith.constant 0 : i32
    %c0_i32_1 = arith.constant 0 : i32
    %c0_i32_2 = arith.constant 0 : i32
    return %c0_i32, %c0_i32_0, %c0_i32_1 : i32, i32, i32
  }
  func.func @transform_6(%arg0: i32) -> (i32, i32) {
    %c0_i32 = arith.constant 0 : i32
    %c0_i32_0 = arith.constant 0 : i32
    %c0_i32_1 = arith.constant 0 : i32
    return %c0_i32, %c0_i32_0 : i32, i32
  }
  func.func @transform_7(%arg0: i32) -> (i32, i32, i32) {
    %c0_i32 = arith.constant 0 : i32
    %c0_i32_0 = arith.constant 0 : i32
    %c0_i32_1 = arith.constant 0 : i32
    %c0_i32_2 = arith.constant 0 : i32
    return %c0_i32, %c0_i32_0, %c0_i32_1 : i32, i32, i32
  }
  func.func @transform_8(%arg0: i32) -> (i32, i32) {
    %c0_i32 = arith.constant 0 : i32
    %c0_i32_0 = arith.constant 0 : i32
    %c0_i32_1 = arith.constant 0 : i32
    return %c0_i32, %c0_i32_0 : i32, i32
  }
  func.func @transform_9(%arg0: i32) -> (i32, i32, i32) {
    %c0_i32 = arith.constant 0 : i32
    %c0_i32_0 = arith.constant 0 : i32
    %c0_i32_1 = arith.constant 0 : i32
    return %arg0, %c0_i32, %c0_i32_0 : i32, i32, i32
  }
}

</mosaic_0001>

<bundles_post_ra>
// kernel: tpu_custom_call.1
= control target key start
LH: loop header
LB: loop body
LE: loop exit
PB: predicated region body
PF: predicated region fallthrough
CT: control target
= control target key end

     0   :  { %14 = vsyncpa [#allocation4], 0  ;;  %s1293_s0 = inlined_call_operand.vmem [shape: f32[2,4,16], index: 0, kind: input, shape index: {}]   ;;  %s1294_s1 = inlined_call_operand.vmem [shape: bf16[8,8,4], index: 1, kind: input, shape index: {}]   ;;  %s1295_s2 = inlined_call_operand.vmem [shape: f32[8,1], index: 2, kind: input, shape index: {}]   ;;  %s1296_s3 = inlined_call_operand.vmem [shape: bf16[5,8,8], index: 3, kind: input, shape index: {}]   ;;  %s1297_s4 = inlined_call_operand.vmem [shape: f32[8,1], index: 4, kind: input, shape index: {}]   ;;  %s1298_s5 = inlined_call_operand.vmem [shape: bf16[3,8,8], index: 5, kind: input, shape index: {}]   ;;  %s1299_s6 = inlined_call_operand.vmem [shape: f32[8,1], index: 6, kind: input, shape index: {}]   ;;  %s1300_s7 = inlined_call_operand.vmem [shape: bf16[1,8,4], index: 7, kind: input, shape index: {}]   ;;  %s1301_s8 = inlined_call_operand.vmem [shape: f32[8,1], index: 8, kind: input, shape index: {}]   ;;  %s1302_s9 = inlined_call_operand.hbm [shape: f32[2,8,16], index: 9, kind: output, shape index: {}]  }
   0x1   :  { %16 = vsyncpa [#allocation4 + $0x1], 0  ;;  %s1089_s30 = smov 0   ;;  %s1091_s10 = smov 0  }
   0x2   :  { %s1093_s11 = smov 0   ;;  %s1095_s12 = smov 0  }
   0x3 LB: > { %s1110_s13 = sadd.s32 4294967295, %s1027_s12   ;;  %s873_s14 = sadd.s32 4294967294, %s1027_s12   ;;  %s1027_s12 = sphi %s1095_s12, %s1308_s12   ;;  %s1023_s11 = sphi %s1093_s11, %s1307_s11   ;;  %s1019_s10 = sphi %s1091_s10, %s1306_s10   ;;  %s1015_s30 = sphi %s1089_s30, %s1305_s30  }
   0x4   : > { %s1114_s15 = sadd.s32 1, %s1027_s12   ;;  %s223_s16 = sadd.s32 1, %s1023_s11 }
   0x5   : > { %s220_s17 = ssub.s32 %s1027_s12, %s1114_s15  ;;  %p233_p0 = scmp.ne.s32.totalorder %s1023_s11, %s1019_s10 }
   0x6   : > { %p221_p1 = scmp.eq.s32.totalorder %s220_s17, 0  ;;  %p234_p2 = scmp.eq.s32.totalorder %s1110_s13, 1 }
   0x7   : > { %p239_p3 = scmp.ne.s32.totalorder %s1019_s10, %s1015_s30  ;;  %p240_p4 = scmp.eq.s32.totalorder %s873_s14, 1 }
   0x8   : > { %s1125_s18 = scalar_select %p221_p1, %s1023_s11, %s223_s16  }
   0x9   : > { %p1127_p5 = por %p234_p2, %p233_p0  ;;  %p1131_p6 = por %p240_p4, %p239_p3 }
   0xa   : > { %p876_p7 = scmp.ge.s32.totalorder %s1027_s12, 1  ;;  %p289_p8 = scmp.lt.s32.totalorder %s1027_s12, 3 }
   0xc   : > { %p290_p9 = pnand %p876_p7, %p289_p8 }
   0xd   : > { %p324_p10 = scmp.lt.s32.totalorder (!%p290_p9), %s1110_s13, 1  ;;  %s1030_s26 = smov (!%p290_p9), 8  }
   0xe   : > { %293 = sbr.rel (%p290_p9) target bundleno = 1218 (0x4c2), region = 56  ;;  %s1031_s27 = smov (!%p290_p9), 123  }
   0xf   : > { %s1032_s28 = smov (!%p290_p9), 122   ;;  %s1033_s29 = smov (!%p290_p9), 121  }
  0x10   : > { %s1034_s14 = smov (!%p290_p9), 117   ;;  %s1035_s16 = smov (!%p290_p9), 120  }
  0x11   : > { %s1036_s17 = smov (!%p290_p9), 119  }
  0x13   : > { %vm329_vm0 = vcmask 60416   ;;  %vm331_vm1 = vcmask 257216   ;;  %v1029_v0 = vmov 0   ;;  %s325_s21 = scalar_select %p324_p10, %s1110_s13, 1  ;;  %vm339_vm2 = vcmask 189504   ;;  %v536_v14 = vld [vmem:[%s1295_s2] sm:$0xff] }
  0x14   : > { %330 = vst.msk [vmem:[#allocation2] sm:$0xf] %vm329_vm0, %v1029_v0  ;;  %962 = vset.pattern.permute.xlu0 %v1029_v0  ;;  %963 = vset.pattern.permute.xlu2 %v1029_v0  ;;  %vm354_vm3 = vcmask 1041408   ;;  %v341_v9 = vld [vmem:[%s1294_s1] sm:$0xf]  ;;  %vm350_vm4 = vcmask 31744  }
  0x15   : > { %332 = vst.msk [vmem:[#allocation2] sm:$0xf] %vm331_vm1, %v1029_v0  ;;  %964 = vset.pattern.permute.xlu1 %v1029_v0  ;;  %s878_s22 = sshll.u32 %s325_s21, 2  ;;  %s1037_s21 = smov 118   ;;  %v888_v13 = vld [vmem:[%s1294_s1 + $0x14] sm:$0xf] }
  0x16   : > { %s327_s25 = scalar_lea.vmem %s1293_s0, %s878_s22  ;;  %s1038_s22 = smov 116   ;;  %v879_v19 = vld [vmem:[%s1294_s1 + $0x4] sm:$0xf]  ;;  %v882_v21 = vld [vmem:[%s1294_s1 + $0x8] sm:$0xf]  ;;  %vm549_vm5 = vcmask 191552  }
  0x17   : > { %v333_v1 = vld [vmem:[%s327_s25] sm:$0xf]  ;;  %v884_v26 = vld [vmem:[%s1294_s1 + $0xc] sm:$0xf]  ;;  %v886_v29 = vld [vmem:[%s1294_s1 + $0x10] sm:$0xf] }
  0x18   : > { %v1142_v2 = vpack.c.bf16 %v333_v1, %v333_v1  ;;  %v890_v30 = vld [vmem:[%s1294_s1 + $0x18] sm:$0xf]  ;;  %v892_v31 = vld [vmem:[%s1294_s1 + $0x1c] sm:$0xf]  ;;  %vm564_vm6 = vcmask 1043456   ;;  %vm560_vm7 = vcmask 64512  }
  0x19   : > { %v894_v1 = vld [vmem:[%s1296_s3 + $0x4] sm:$0xf]  ;;  %vm796_vm8 = vcmask 130048  }
  0x1a   : > { %336 = vrot.lane.b32.xlu0 %v1142_v2, %s1030_s26 }
  0x8c   : > { %v337_v3 = vpop.permute.xlu0 %336 }
  0x8d   : > { %340 = vst.msk [vmem:[#allocation2] sm:$0x3] %vm339_vm2, %v337_v3  ;;  %v674_v3 = vld [vmem:[%s1297_s4] sm:$0xff] }
  0x94   : > { %v342_v4 = vld [vmem:[#allocation2] sm:$0x3] }
  0x95   : > { %v346_v5 = vunpack.c.l.b16 %v342_v4 }
  0x97   : > { %v347_v6 = vpack.c.b16 %v346_v5, %v346_v5 }
  0x99   : > { %371 = vrot.lane.b32.xlu2 %v347_v6, %s1031_s27  ;;  %348 = vrot.lane.b32.xlu1 %v347_v6, %s1032_s28 }
  0x9a   : > { %394 = vrot.lane.b32.xlu0 %v347_v6, %s1033_s29 }
  0xa1   : > { %490 = vrot.lane.b32.xlu2 %v347_v6, %s1034_s14  ;;  %418 = vrot.lane.b32.xlu1 %v347_v6, %s1035_s16  ;;  %s910_s14 = sshll.u32 %s1110_s13, 3 }
  0xa2   : > { %442 = vrot.lane.b32.xlu0 %v347_v6, %s1036_s17  ;;  %s809_s23 = scalar_lea.hbm %s1302_s9, %s910_s14 }
  0xa9   : > { %466 = vrot.lane.b32.xlu2 %v347_v6, %s1037_s21  ;;  %514 = vrot.lane.b32.xlu1 %v347_v6, %s1038_s22  ;;  %v899_v6 = vld [vmem:[%s1296_s3 + $0xc] sm:$0xf] }
  0xaa   : > { %539 = vperm.xlu0 %962, %v536_v14  }
  0xf3   : > { %v372_v7 = vpop.permute.xlu2 %371 }
  0xf4   : > { %v377_v8 = vsel %vm354_vm3, %v372_v7, 0 }
  0xf5   : > { %386 = vmatpush.bf16.msra.mxu1 %v377_v8 }
  0xf8   : > { %881 = vmatmul.msk.bf16.vlgmr.msra.gmra.mxu1 %vm350_vm4, %v341_v9 }
  0xfb   : > { %v491_v10 = vpop.permute.xlu2 %490 }
  0xfc   : > { %v496_v20 = vsel %vm354_vm3, %v491_v10, 0 }
 0x103   : > { %v467_v11 = vpop.permute.xlu2 %466 }
 0x104   : > { %v472_v12 = vsel %vm354_vm3, %v467_v11, 0  ;;  %v551_v11 = vld [vmem:[%s1296_s3] sm:$0xf] }
 0x105   : > { %481 = vmatpush.bf16.msrb.mxu1 %v472_v12  ;;  %v897_v12 = vld [vmem:[%s1296_s3 + $0x8] sm:$0xf] }
 0x108   : > { %889 = vmatmul.msk.bf16.vlgmr.msrb.gmra.mxu1 %vm350_vm4, %v888_v13 }
 0x10b   : > { %v349_v15 = vpop.permute.xlu1 %348 }
 0x10c   : > { %v395_v16 = vpop.permute.xlu0 %394  ;;  %v356_v17 = vsel %vm354_vm3, %v349_v15, 0  ;;  %v901_v15 = vld [vmem:[%s1296_s3 + $0x10] sm:$0xf] }
 0x10d   : > { %365 = vmatpush.bf16.msra.mxu0 %v356_v17  ;;  %v400_v18 = vsel %vm354_vm3, %v395_v16, 0 }
 0x10e   : > { %409 = vmatpush.bf16.msra.mxu2 %v400_v18  ;;  %v779_v18 = vsel %vm354_vm3, %v1142_v2, 0 }
 0x110   : > { %880 = vmatmul.msk.bf16.vlgmr.msra.gmra.mxu0 %vm350_vm4, %v879_v19  ;;  %v768_v19 = vld [vmem:[%s1300_s7] sm:$0xf] }
 0x111   : > { %883 = vmatmul.msk.bf16.vlgmr.msra.gmra.mxu2 %vm350_vm4, %v882_v21 }
 0x112   : > { %505 = vmatpush.bf16.msrb.mxu2 %v496_v20 }
 0x113   : > { %v419_v22 = vpop.permute.xlu1 %418 }
 0x114   : > { %v443_v23 = vpop.permute.xlu0 %442  ;;  %v424_v24 = vsel %vm354_vm3, %v419_v22, 0 }
 0x115   : > { %433 = vmatpush.bf16.msra.mxu3 %v424_v24  ;;  %v448_v25 = vsel %vm354_vm3, %v443_v23, 0 }
 0x116   : > { %457 = vmatpush.bf16.msrb.mxu0 %v448_v25 }
 0x118   : > { %885 = vmatmul.msk.bf16.vlgmr.msra.gmra.mxu3 %vm350_vm4, %v884_v26 }
 0x11b   : > { %v515_v27 = vpop.permute.xlu1 %514 }
 0x11c   : > { %v520_v28 = vsel %vm354_vm3, %v515_v27, 0  ;;  %v540_v52 = vpop.permute.xlu0 %539 }
 0x11d   : > { %529 = vmatpush.bf16.msrb.mxu3 %v520_v28 }
 0x120   : > { %887 = vmatmul.msk.bf16.vlgmr.msrb.gmra.mxu0 %vm350_vm4, %v886_v29 }
 0x121   : > { %891 = vmatmul.msk.bf16.vlgmr.msrb.gmra.mxu2 %vm350_vm4, %v890_v30 }
 0x128   : > { %893 = vmatmul.msk.bf16.vlgmr.msrb.gmra.mxu3 %vm350_vm4, %v892_v31 }
 0x175   : > { %v388_v32 = vpop.f32.mrf.mxu1 }
 0x17d   : > { %v390_v33 = vpop.f32.mrf.mxu1 }
 0x185   : > { %v483_v34 = vpop.f32.mrf.mxu1 }
 0x18d   : > { %v367_v35 = vpop.f32.mrf.mxu0  ;;  %v485_v36 = vpop.f32.mrf.mxu1 }
 0x18e   : > { %v389_v39 = vadd.f32 %v388_v32, %v367_v35 }
 0x194   : > { %v411_v37 = vpop.f32.mrf.mxu2 }
 0x195   : > { %v369_v38 = vpop.f32.mrf.mxu0  ;;  %v415_v43 = vadd.f32 %v411_v37, %v389_v39  ;;  %v769_v39 = vld [vmem:[%s1301_s8] sm:$0xff] }
 0x19b   : > { %v435_v40 = vpop.f32.mrf.mxu3 }
 0x19c   : > { %v413_v41 = vpop.f32.mrf.mxu2  ;;  %v439_v44 = vadd.f32 %v435_v40, %v415_v43 }
 0x19d   : > { %v459_v42 = vpop.f32.mrf.mxu0 }
 0x19e   : > { %v463_v46 = vadd.f32 %v459_v42, %v439_v44  ;;  %v761_v42 = vld [vmem:[%s1299_s6] sm:$0xff] }
 0x1a0   : > { %v487_v49 = vadd.f32 %v483_v34, %v463_v46 }
 0x1a3   : > { %v437_v45 = vpop.f32.mrf.mxu3 }
 0x1a4   : > { %v507_v47 = vpop.f32.mrf.mxu2  ;;  %v906_v45 = vld [vmem:[%s1298_s5 + $0x8] sm:$0xf] }
 0x1a5   : > { %v461_v48 = vpop.f32.mrf.mxu0  ;;  %v511_v50 = vadd.f32 %v507_v47, %v487_v49 }
 0x1ab   : > { %v531_v51 = vpop.f32.mrf.mxu3 }
 0x1ac   : > { %v509_v53 = vpop.f32.mrf.mxu2  ;;  %v535_v54 = vadd.f32 %v531_v51, %v511_v50  ;;  %v903_v50 = vld [vmem:[%s1298_s5 + $0x4] sm:$0xf]  ;;  %v688_v51 = vld [vmem:[%s1298_s5] sm:$0xf] }
 0x1ae   : > { %v542_v55 = vadd.f32 %v540_v52, %v535_v54 }
 0x1b0   : > { %v543_v56 = vmax.f32 %v542_v55, 0.0 }
 0x1b2   : > { %v544_v57 = vpack.c.bf16 %v543_v56, %v543_v56 }
 0x1b3   : > { %v533_v58 = vpop.f32.mrf.mxu3 }
 0x1b4   : > { %546 = vrot.lane.b32.xlu1 %v544_v57, %s1030_s26 }
 0x226   : > { %v547_v59 = vpop.permute.xlu1 %546 }
 0x227   : > { %550 = vst.msk [vmem:[#allocation2] sm:$0xf] %vm549_vm5, %v547_v59 }
 0x22e   : > { %v552_v60 = vld [vmem:[#allocation2] sm:$0xf] }
 0x22f   : > { %v556_v61 = vunpack.c.l.b16 %v552_v60 }
 0x231   : > { %v557_v62 = vpack.c.b16 %v556_v61, %v556_v61 }
 0x233   : > { %581 = vrot.lane.b32.xlu0 %v557_v62, %s1032_s28  ;;  %604 = vrot.lane.b32.xlu1 %v557_v62, %s1035_s16 }
 0x234   : > { %558 = vrot.lane.b32.xlu2 %v557_v62, %s1033_s29 }
 0x23b   : > { %652 = vrot.lane.b32.xlu1 %v557_v62, %s1037_s21  ;;  %s321_s21 = sand.u32 1, %s1019_s10  }
 0x23c   : > { %628 = vrot.lane.b32.xlu2 %v557_v62, %s1036_s17  ;;  %s877_s27 = sshll.u32 %s321_s21, 3  ;;  %s799_s13 = scalar_lea.sflag [#allocation4], %s321_s21 }
 0x244   : > { %677 = vperm.xlu2 %963, %v674_v3  }
 0x28e   : > { %v559_v63 = vpop.permute.xlu2 %558 }
 0x28f   : > { %v566_v0 = vsel %vm564_vm6, %v559_v63, 0 }
 0x290   : > { %575 = vmatpush.bf16.msra.mxu0 %v566_v0 }
 0x293   : > { %895 = vmatmul.msk.bf16.vlgmr.msra.gmra.mxu0 %vm560_vm7, %v894_v1 }
 0x296   : > { %v629_v4 = vpop.permute.xlu2 %628 }
 0x297   : > { %v634_v5 = vsel %vm564_vm6, %v629_v4, 0 }
 0x298   : > { %643 = vmatpush.bf16.msra.mxu3 %v634_v5 }
 0x29b   : > { %900 = vmatmul.msk.bf16.vlgmr.msra.gmra.mxu3 %vm560_vm7, %v899_v6 }
 0x29e   : > { %v678_v29 = vpop.permute.xlu2 %677 }
 0x2a5   : > { %v582_v7 = vpop.permute.xlu0 %581  ;;  %v605_v8 = vpop.permute.xlu1 %604 }
 0x2a6   : > { %v587_v9 = vsel %vm564_vm6, %v582_v7, 0  ;;  %v610_v10 = vsel %vm564_vm6, %v605_v8, 0 }
 0x2a7   : > { %596 = vmatpush.bf16.msra.mxu1 %v587_v9  ;;  %619 = vmatpush.bf16.msra.mxu2 %v610_v10 }
 0x2aa   : > { %896 = vmatmul.msk.bf16.vlgmr.msra.gmra.mxu1 %vm560_vm7, %v551_v11  ;;  %898 = vmatmul.msk.bf16.vlgmr.msra.gmra.mxu2 %vm560_vm7, %v897_v12 }
 0x2ad   : > { %v653_v13 = vpop.permute.xlu1 %652 }
 0x2ae   : > { %v658_v14 = vsel %vm564_vm6, %v653_v13, 0 }
 0x2af   : > { %667 = vmatpush.bf16.msrb.mxu0 %v658_v14 }
 0x2b2   : > { %902 = vmatmul.msk.bf16.vlgmr.msrb.gmra.mxu0 %vm560_vm7, %v901_v15 }
 0x2b3   : > { %788 = vmatpush.bf16.msra.mxu0 %v779_v18 }
 0x2c2   : > { %908 = vmatmul.msk.bf16.vlgmr.msra.gmra.mxu0 %vm350_vm4, %v768_v19 }
 0x310   : > { %v577_v16 = vpop.f32.mrf.mxu0 }
 0x318   : > { %v579_v17 = vpop.f32.mrf.mxu0 }
 0x31e   : > { %v645_v20 = vpop.f32.mrf.mxu3 }
 0x326   : > { %v647_v21 = vpop.f32.mrf.mxu3 }
 0x327   : > { %v598_v22 = vpop.f32.mrf.mxu1 }
 0x328   : > { %v599_v23 = vadd.f32 %v598_v22, %v577_v16 }
 0x32d   : > { %v621_v24 = vpop.f32.mrf.mxu2 }
 0x32e   : > { %v625_v25 = vadd.f32 %v621_v24, %v599_v23 }
 0x32f   : > { %v600_v26 = vpop.f32.mrf.mxu1  ;;  %v669_v27 = vpop.f32.mrf.mxu0 }
 0x330   : > { %v649_v28 = vadd.f32 %v645_v20, %v625_v25 }
 0x332   : > { %v673_v30 = vadd.f32 %v669_v27, %v649_v28 }
 0x334   : > { %v680_v31 = vadd.f32 %v678_v29, %v673_v30 }
 0x335   : > { %v623_v2 = vpop.f32.mrf.mxu2 }
 0x336   : > { %v681_v32 = vmax.f32 %v680_v31, 0.0 }
 0x337   : > { %v671_v33 = vpop.f32.mrf.mxu0 }
 0x338   : > { %v682_v34 = vpack.c.bf16 %v681_v32, %v681_v32 }
 0x33a   : > { %684 = vrot.lane.b32.xlu0 %v682_v34, %s1030_s26 }
 0x33f   : > { %v790_v40 = vpop.f32.mrf.mxu0 }
 0x347   : > { %v792_v41 = vpop.f32.mrf.mxu0 }
 0x3ac   : > { %v685_v35 = vpop.permute.xlu0 %684 }
 0x3ad   : > { %687 = vst.msk [vmem:[#allocation2] sm:$0xf] %vm549_vm5, %v685_v35 }
 0x3b4   : > { %v689_v36 = vld [vmem:[#allocation2] sm:$0xf] }
 0x3b5   : > { %v693_v37 = vunpack.c.l.b16 %v689_v36 }
 0x3b7   : > { %v694_v38 = vpack.c.b16 %v693_v37, %v693_v37 }
 0x3b9   : > { %695 = vrot.lane.b32.xlu0 %v694_v38, %s1035_s16  ;;  %739 = vrot.lane.b32.xlu2 %v694_v38, %s1036_s17  ;;  %s323_s16 = scalar_lea.vmem [#allocation3], %s877_s27  ;;  %s985_s27 = scalar_lea.hbm %s1302_s9, 16 }
 0x3ba   : > { %716 = vrot.lane.b32.xlu1 %v694_v38, %s1033_s29  ;;  %s811_s17 = sshll.u32 %s323_s16, 4  ;;  %s813_s29 = sshll.u32 %s809_s23, 4  ;;  %s812_s17 = int_to_ptr.vmem [resolvable:$true] %s811_s17  ;;  %s814_s29 = int_to_ptr.hbm [resolvable:$true] %s813_s29 }
 0x3bb   : > { %s979_s24 = sshra.s32 %s814_s29, 4  ;;  %s980_s24 = int_to_ptr.hbm [resolvable:$true] %s979_s24 }
 0x3bc   : > { %s981_s25 = scalar_lea.hbm %s980_s24, 8  ;;  %p986_p0 = scmp.lt.s32.totalorder %s980_s24, %s1302_s9 }
 0x3bd   : > { %p982_p11 = scmp.ne.s32.totalorder %s980_s24, %s981_s25  ;;  %p987_p1 = scmp.lt.s32.totalorder %s985_s27, %s981_s25 }
 0x3bf   : > { %p983_p12 = pnand %p982_p11, %p1127_p5  ;;  %p988_p2 = por %p987_p1, %p986_p0 }
 0x3c1   : > { %772 = vperm.xlu2 %963, %v769_v39   ;;  %p984_p13 = pneg %p983_p12 }
 0x3c2   : > { %764 = vperm.xlu1 %964, %v761_v42  }
 0x3c3   : > { %p989_p3 = pnand %p988_p2, %p984_p13 }
 0x413   : > { %v740_v43 = vpop.permute.xlu2 %739 }
 0x414   : > { %v745_v44 = vsel %vm564_vm6, %v740_v43, 0 }
 0x415   : > { %754 = vmatpush.bf16.msrb.mxu3 %v745_v44 }
 0x418   : > { %907 = vmatmul.msk.bf16.vlgmr.msrb.gmra.mxu3 %vm560_vm7, %v906_v45 }
 0x41b   : > { %v773_v58 = vpop.permute.xlu2 %772 }
 0x41c   : > { %v791_v61 = vadd.f32 %v790_v40, %v773_v58 }
 0x42b   : > { %v696_v46 = vpop.permute.xlu0 %695 }
 0x42c   : > { %v701_v47 = vsel %vm564_vm6, %v696_v46, 0  ;;  %v717_v48 = vpop.permute.xlu1 %716 }
 0x42d   : > { %v722_v49 = vsel %vm564_vm6, %v717_v48, 0  ;;  %710 = vmatpush.bf16.msrb.mxu1 %v701_v47 }
 0x42e   : > { %731 = vmatpush.bf16.msrb.mxu2 %v722_v49 }
 0x430   : > { %904 = vmatmul.msk.bf16.vlgmr.msrb.gmra.mxu1 %vm560_vm7, %v903_v50 }
 0x431   : > { %905 = vmatmul.msk.bf16.vlgmr.msrb.gmra.mxu2 %vm560_vm7, %v688_v51 }
 0x434   : > { %v765_v59 = vpop.permute.xlu1 %764 }
 0x49b   : > { %v756_v52 = vpop.f32.mrf.mxu3 }
 0x4a3   : > { %v758_v53 = vpop.f32.mrf.mxu3 }
 0x4ad   : > { %v712_v54 = vpop.f32.mrf.mxu1 }
 0x4b4   : > { %v733_v55 = vpop.f32.mrf.mxu2 }
 0x4b5   : > { %v734_v56 = vadd.f32 %v733_v55, %v712_v54  ;;  %v714_v57 = vpop.f32.mrf.mxu1 }
 0x4b7   : > { %v760_v60 = vadd.f32 %v756_v52, %v734_v56 }
 0x4b9   : > { %v767_v62 = vadd.f32 %v765_v59, %v760_v60 }
 0x4bb   : > { %v794_v63 = vadd.f32 %v791_v61, %v767_v62 }
 0x4bc   : > { %v735_v0 = vpop.f32.mrf.mxu2 }
 0x4bd   : > { %v795_v1 = vmax.f32 %v794_v63, 0.0 }
 0x4bf   : > { %797 = vst.msk [vmem:[%s323_s16] sm:$0xff] %vm796_vm8, %v795_v1 }
 0x4c0   : > { %992 = shalt.err (!%p989_p3)
}
 0x4c1   : > { %913 = dma.vmem_to_hbm [thread:$0]  (%p1127_p5), %s812_s17, 128, %s814_s29, %s799_s13  }
 0x4c2 PF: > { %p919_p4 = scmp.ge.s32.totalorder %s1027_s12, 2  ;;  %s825_s21 = sand.u32 1, %s1015_s30  }
 0x4c3   : > { %s826_s23 = scalar_lea.sflag [#allocation4], %s825_s21 }
 0x4c4   : > { %p916_p7 = pnand %p919_p4, %p1131_p6 }
 0x4c6   : > { %p917_p8 = pneg %p916_p7 }
 0x4c8   : > { %1010 = dma.done.wait (%p917_p8), %s826_s23, 128  }
 0x4c9   : > { %1012 = vsyncadd (%p917_p8), %s826_s23, 4294967168  ;;  %p19_p9 = scmp.ge.s32.totalorder %s1114_s15, 4   ;;  %s1305_s30 = smov %s1019_s10 }
 0x4ca   : > { %s1306_s10 = smov %s1023_s11  ;;  %s1307_s11 = smov %s1125_s18 }
 0x4cb   : > { %s1308_s12 = smov %s1114_s15  ;;  %21 = sbr.rel (!%p19_p9) target bundleno = 3 (0x3), region = 104 }
 0x4d0   :  { %832 = vsyncpa [#allocation4], 1 }
 0x4d1   :  { %834 = vsyncpa [#allocation4 + $0x1], 1 }

</bundles_post_ra>
